<compile_context>
chip_gen: v5e
topology: v5e:2x2
jax: 0.10.0
libtpu: 0.0.40
codegen_flags: <defaults>
</compile_context>

<pallas_src>
import jax
import jax.numpy as jnp
from jax.experimental import pallas as pl
from jax.experimental.pallas import tpu as pltpu

B, IN, OUT = 1, 10, 100
OUT_PAD = 128  # pad lane dim to one full vreg lane width


def linear_add_relu_kernel(x_ref, wt_ref, b_ref, other_ref, o_ref):
    # v1 = x @ Wt (+ bias), v2 = v1 + other, v3 = relu(v2) -- all in one pass.
    v1 = jnp.dot(x_ref[...], wt_ref[...], preferred_element_type=jnp.float32)
    o_ref[...] = jnp.maximum(v1 + b_ref[...] + other_ref[...], 0.0)


def prepare_params(weight, bias):
    """One-time (parameter-load-time) prep: transpose + zero-pad to 128 lanes."""
    wt_pad = jnp.pad(weight.T.astype(jnp.float32), ((0, 0), (0, OUT_PAD - OUT)))
    b_pad = jnp.pad(bias.astype(jnp.float32).reshape(1, OUT), ((0, 0), (0, OUT_PAD - OUT)))
    return wt_pad, b_pad  # [IN, 128], [1, 128]


@jax.jit
def model_forward(x, wt_pad, b_pad, other):
    # Pad `other` to the lane-dense width; it doubles as the output buffer.
    other_pad = jnp.pad(other.astype(jnp.float32), ((0, 0), (0, OUT_PAD - OUT)))
    vmem = pltpu.MemorySpace.VMEM
    out_pad = pl.pallas_call(
        linear_add_relu_kernel,
        out_shape=jax.ShapeDtypeStruct((B, OUT_PAD), jnp.float32),
        in_specs=[
            pl.BlockSpec(memory_space=vmem),  # x        [B, IN]
            pl.BlockSpec(memory_space=vmem),  # weight^T [IN, OUT_PAD]
            pl.BlockSpec(memory_space=vmem),  # bias     [1, OUT_PAD]
            pl.BlockSpec(memory_space=vmem),  # other    [B, OUT_PAD]
        ],
        out_specs=pl.BlockSpec(memory_space=vmem),
        input_output_aliases={3: 0},  # accumulate into `other`'s buffer
    )(x, wt_pad, b_pad, other_pad)
    return out_pad[:, :OUT]


if __name__ == "__main__":
    key = jax.random.PRNGKey(0)
    kx, ko, kw, kb = jax.random.split(key, 4)

    # Synthetic Linear(10, 100) parameters (PyTorch convention: weight [OUT, IN]).
    weight = jax.random.normal(kw, (OUT, IN), dtype=jnp.float32) * 0.1
    bias = jax.random.normal(kb, (OUT,), dtype=jnp.float32) * 0.1

    # Inputs consistent with forward(x1, _other1).
    x1 = jax.random.normal(kx, (B, IN), dtype=jnp.float32)
    other1 = jax.random.normal(ko, (B, OUT), dtype=jnp.float32)

    wt_pad, b_pad = prepare_params(weight, bias)

    out = model_forward(x1, wt_pad, b_pad, other1)
    out = jax.block_until_ready(out)

    # Reference check in plain JAX.
    ref = jnp.maximum(x1 @ weight.T + bias + other1, 0.0)
    assert out.shape == (B, OUT)
    assert jnp.allclose(out, ref, atol=1e-5), "mismatch vs reference"

    print("KERNEL_OK")
</pallas_src>

<mosaic_0001>
module attributes {stable_mosaic.version = 11 : i64} {
  func.func @linear_add_relu_kernel(%arg0: memref<1x10xf32, #tpu.memory_space<vmem>>, %arg1: memref<10x128xf32, #tpu.memory_space<vmem>>, %arg2: memref<1x128xf32, #tpu.memory_space<vmem>>, %arg3: memref<1x128xf32, #tpu.memory_space<vmem>>, %arg4: memref<1x128xf32, #tpu.memory_space<vmem>>) attributes {dimension_semantics = [], scalar_prefetch = 0 : i64, scratch_operands = 0 : i64, tpu.core_type = #tpu.core_type<tc>} {
    %c0 = arith.constant 0 : index
    %c0_0 = arith.constant 0 : index
    %0 = vector.load %arg0[%c0, %c0_0] : memref<1x10xf32, #tpu.memory_space<vmem>>, vector<1x10xf32>
    %c0_1 = arith.constant 0 : index
    %c0_2 = arith.constant 0 : index
    %1 = vector.load %arg1[%c0_1, %c0_2] : memref<10x128xf32, #tpu.memory_space<vmem>>, vector<10x128xf32>
    %cst = arith.constant dense<0.000000e+00> : vector<1x128xf32>
    %2 = tpu.matmul %0, %1, %cst {dimension_numbers = #tpu.dot_dimension_numbers<[1], [0], [0], [1], [0, 0, 1, 1], [], []>} : vector<1x10xf32>, vector<10x128xf32>, vector<1x128xf32> -> vector<1x128xf32>
    %c0_3 = arith.constant 0 : index
    %c0_4 = arith.constant 0 : index
    %3 = vector.load %arg2[%c0_3, %c0_4] : memref<1x128xf32, #tpu.memory_space<vmem>>, vector<1x128xf32>
    %4 = arith.addf %2, %3 : vector<1x128xf32>
    %c0_5 = arith.constant 0 : index
    %c0_6 = arith.constant 0 : index
    %5 = vector.load %arg3[%c0_5, %c0_6] : memref<1x128xf32, #tpu.memory_space<vmem>>, vector<1x128xf32>
    %6 = arith.addf %4, %5 : vector<1x128xf32>
    %cst_7 = arith.constant 0.000000e+00 : f32
    %7 = vector.broadcast %cst_7 : f32 to vector<1x128xf32>
    %8 = arith.maximumf %6, %7 : vector<1x128xf32>
    %c0_8 = arith.constant 0 : index
    %c0_9 = arith.constant 0 : index
    %9 = vector.load %arg4[%c0_8, %c0_9] : memref<1x128xf32, #tpu.memory_space<vmem>>, vector<1x128xf32>
    tpu.vector_store %arg4[%c0_8, %c0_9], %8 {strides = array<i32>} : memref<1x128xf32, #tpu.memory_space<vmem>>, vector<1x128xf32>,
    return
  }
}

</mosaic_0001>

<bundles_post_ra>
// kernel: model_forward.1
= control target key start
LH: loop header
LB: loop body
LE: loop exit
PB: predicated region body
PF: predicated region fallthrough
CT: control target
= control target key end

     0   :  { %9 = vsyncpa [#allocation3], 0  ;;  %s105_s18 = smov [#allocation2]   ;;  %s106_s20 = smov 128   ;;  %s148_s0 = inlined_call_operand.vmem [shape: f32[1,10], index: 0, kind: input, shape index: {}]   ;;  %s149_s1 = inlined_call_operand.hbm [shape: f32[10,128], index: 1, kind: input, shape index: {}]   ;;  %s150_s2 = inlined_call_operand.vmem [shape: f32[1,128], index: 2, kind: input, shape index: {}]   ;;  %s151_s3 = inlined_call_operand.vmem [shape: f32[1,128], index: 3, kind: input, shape index: {}, may-alias: {3,4}]   ;;  %s152_s4 = inlined_call_operand.vmem [shape: f32[1,128], index: 4, kind: output, shape index: {}, may-alias: {3,4}]  }
   0x1   :  { %s16_s17 = sshll.u32 %s149_s1, 4  ;;  %s18_s19 = sshll.u32 %s105_s18, 4  ;;  %s17_s17 = int_to_ptr.hbm [resolvable:$true] %s16_s17  ;;  %s19_s19 = int_to_ptr.vmem [resolvable:$true] %s18_s19 }
   0x2   :  { %s107_s21 = smov 8  }
   0x3   :  { %24 = dma.hbm_to_vmem [thread:$0]  %s17_s17, 256, %s19_s19, [#allocation3], %s106_s20, %s106_s20, %s107_s21  }
   0x4   :  { %103 = dma.done.wait [#allocation3], 256  }
   0x5   :  { %104 = vsyncadd [#allocation3], 4294967040  ;;  %vm41_vm0 = vcmask 1041408   ;;  %v35_v0 = vld [vmem:[#allocation2 + $0x8] sm:$0x3]  ;;  %v34_v1 = vld [vmem:[#allocation2] sm:$0xff] }
   0x6   :  { %74 = vmatpush.msk.msra.mxu0 %vm41_vm0, %v35_v0  ;;  %v33_v2 = vld [vmem:[%s148_s0] sm:$0x1]  ;;  %vm37_vm1 = vcmask 80896  }
   0x7   :  { %v36_v3 = vld [vmem:[%s150_s2] sm:$0x1] }
   0x8   :  { %60 = vmatpush.msra.mxu0 %v34_v1  ;;  %v65_v5 = vld [vmem:[%s151_s3] sm:$0x1] }
   0x9   :  { %75 = vmatmul.msk.f32.vlgmr.msra.gmra.mxu0 %vm37_vm1, %v33_v2 }
  0x86   :  { %v62_v4 = vpop.f32.mrf.mxu0 }
  0x87   :  { %v63_v6 = vadd.f32 %v62_v4, %v36_v3 }
  0x89   :  { %v66_v7 = vadd.f32 %v65_v5, %v63_v6 }
  0x8b   :  { %v67_v8 = vmax.f32 %v66_v7, 0.0 }
  0x8d   :  { %68 = vst [vmem:[%s152_s4] sm:$0x1] %v67_v8 }
  0x8e   :  { %73 = vsyncpa [#allocation3], 1 }

</bundles_post_ra>
